<compile_context>
chip_gen: v5e
topology: v5e:2x2
jax: 0.10.0
libtpu: 0.0.40
codegen_flags: <defaults>
</compile_context>

<pallas_src>
import functools

import jax
import jax.numpy as jnp
from jax.experimental import pallas as pl
from jax.experimental.pallas import tpu as pltpu


def _round_up(x, m):
    return ((x + m - 1) // m) * m


# ----------------------------------------------------------------------------
# Fused MGN_homo model kernel: relu(x @ W1m + b1) @ W2m + b2, lane-dense.
# ----------------------------------------------------------------------------
def _mgn_fused_kernel(x_ref, w1_ref, b1_ref, w2_ref, b2_ref, o_ref):
    # x_ref: (1, TL)  batch tile with N on the lane axis (lane-dense load/store).
    # w1/b1/w2: (H, 1) masked layer1 weights / bias / layer2 weights.  b2: (1, 1).
    x = x_ref[...].astype(jnp.float32)             # upcast at load (v5e-safe bf16 I/O)
    h = w1_ref[...] * x + b1_ref[...]              # (H,1)*(1,TL)+(H,1) -> (H,TL)  VPU
    h = jnp.maximum(h, 0.0)                        # ReLU                          VPU
    # layer2: multiply by (H,1) weights, reduce over the sublane (H) axis.     XLU
    y = jnp.sum(h * w2_ref[...], axis=0, keepdims=True) + b2_ref[...]   # (1, TL)
    o_ref[...] = y.astype(o_ref.dtype)             # full-width unmasked lane store


def mgn_homo_forward(x, w1m, b1, w2m, b2, *, io_dtype=jnp.float32, max_lanes=4096):
    """Fused forward of MGN_Model (1 -> H -> ReLU -> 1).  x: (N, 1) -> (N, 1).

    The hidden (H, TL) activation never touches HBM; only x and y are streamed.
    """
    n = x.shape[0]
    hdim = w1m.shape[0]
    x_row = jnp.asarray(x, io_dtype).reshape(1, n)       # free: (N,1) -> (1,N)

    n_lanes = _round_up(n, 128)
    tl = min(max_lanes, n_lanes)
    if n_lanes > 128:
        # >= 2 grid steps so dimension_semantics=("parallel",) can shard the batch
        # across v7x's two TensorCores (no effect on v5e/v6e).
        tl = min(tl, _round_up((n_lanes + 1) // 2, 128))
    grid = (pl.cdiv(n, tl),)

    y_row = pl.pallas_call(
        _mgn_fused_kernel,
        out_shape=jax.ShapeDtypeStruct((1, n), io_dtype),
        grid=grid,
        in_specs=[
            pl.BlockSpec((1, tl), lambda i: (0, i)),       # x: lane-dense batch tile
            pl.BlockSpec((hdim, 1), lambda i: (0, 0)),     # W1*mask1 : VMEM-resident
            pl.BlockSpec((hdim, 1), lambda i: (0, 0)),     # b1
            pl.BlockSpec((hdim, 1), lambda i: (0, 0)),     # W2*mask2
            pl.BlockSpec((1, 1), lambda i: (0, 0)),        # b2
        ],
        out_specs=pl.BlockSpec((1, tl), lambda i: (0, i)),
        compiler_params=pltpu.CompilerParams(
            dimension_semantics=("parallel",)),
    )(x_row, w1m, b1, w2m, b2)
    return y_row.reshape(n, 1)                             # free: (1,N) -> (N,1)


# ----------------------------------------------------------------------------
# Standalone MGN_Layer kernel (keeps the module's (N, Dout) output contract).
# The lane-dense reformulation of the din1 / dout1 branches is realized by the
# fused kernel above (the hidden activation stays in VMEM as (H, TL)).
# ----------------------------------------------------------------------------
def _mgn_layer_kernel(x_ref, w_ref, b_ref, o_ref, *, mode):
    x = x_ref[...].astype(jnp.float32)   # upcast at load (v5e-safe when streaming bf16)
    w = w_ref[...]
    b = b_ref[...]
    if mode == "din1":
        # (TM,1) * (1,Dout) + (1,Dout): contraction length 1 -> pure VPU, off the MXU.
        y = x * w + b
    elif mode == "dout1":
        # (TM,Din) * (1,Din) row-vector weights, lane reduce to (TM,1).
        y = jnp.sum(x * w, axis=-1, keepdims=True) + b
    else:
        # General fallback: MXU matmul with f32 accumulation.
        y = jnp.dot(x, w, preferred_element_type=jnp.float32) + b
    o_ref[...] = y.astype(o_ref.dtype)


def _choose_row_tile(n, din, dout, itemsize, *,
                     vmem_budget_bytes=12 << 20, max_rows=4096, small_bytes=1 << 20):
    """Row tile from the REAL (lane-padded) VMEM footprint, not the logical shape."""
    din_pad = _round_up(din, 128)          # x tile pads its last dim to 128 lanes
    dout_pad = _round_up(dout, 128)        # y tile pads its last dim to 128 lanes
    stream_bytes = n * (din_pad + dout_pad) * itemsize
    if stream_bytes <= small_bytes:
        # Small-problem fast path: one whole-array block, zero per-step overhead.
        return _round_up(max(n, 1), 8)
    w_bytes = _round_up(din, 8) * dout_pad * 4              # VMEM-resident weights
    per_row = 2 * (din_pad + dout_pad) * itemsize           # double-buffered x + y
    tm = max(8, (vmem_budget_bytes - w_bytes) // per_row)
    tm = min(tm, max_rows, _round_up(n, 8))
    if pl.cdiv(n, tm) < 2:
        tm = max(8, (n + 1) // 2)          # >= 2 steps -> v7x megacore sharding
    return _round_up(tm, 8)


def mgn_layer_forward(x, w_kernel, b_kernel, *, mode, dout, io_dtype=jnp.float32):
    """y = x @ (W*mask) + b with weights already masked & oriented.  x: (N, Din)."""
    n, din = x.shape
    itemsize = jnp.dtype(io_dtype).itemsize
    tm = _choose_row_tile(n, din, dout, itemsize)
    grid = (pl.cdiv(n, tm),)
    kernel = functools.partial(_mgn_layer_kernel, mode=mode)

    return pl.pallas_call(
        kernel,
        out_shape=jax.ShapeDtypeStruct((n, dout), io_dtype),
        grid=grid,
        in_specs=[
            pl.BlockSpec((tm, din), lambda i: (i, 0)),        # x: row tile
            pl.BlockSpec(w_kernel.shape, lambda i: (0, 0)),   # weights: VMEM-resident
            pl.BlockSpec(b_kernel.shape, lambda i: (0, 0)),   # bias: VMEM-resident
        ],
        out_specs=pl.BlockSpec((tm, dout), lambda i: (i, 0)),
        compiler_params=pltpu.CompilerParams(
            dimension_semantics=("parallel",)),               # batch axis -> megacore
    )(jnp.asarray(x, io_dtype), w_kernel, b_kernel)


# ----------------------------------------------------------------------------
# Module wrappers.
# ----------------------------------------------------------------------------
class MGNLayerPallas:
    """JAX/Pallas re-implementation of the PyTorch MGN_Layer forward pass."""

    def __init__(self, input_dim, output_dim, dropout_prob, key):
        assert 0.0 <= dropout_prob < 1.0, "dropout_prob must be in [0, 1)"
        self.input_dim = int(input_dim)
        self.output_dim = int(output_dim)
        self.dropout_prob = float(dropout_prob)

        kw, kb = jax.random.split(key)
        # Matches nn.Parameter(torch.Tensor(...).uniform_(-0.01, 0.01)).
        self.weights = jax.random.uniform(
            kw, (self.input_dim, self.output_dim), jnp.float32, -0.01, 0.01)
        self.biases = jax.random.uniform(
            kb, (self.output_dim,), jnp.float32, -0.01, 0.01)

        if self.input_dim == 1:
            self.mode = "din1"      # weights presented as (1, Dout)
        elif self.output_dim == 1:
            self.mode = "dout1"     # weights presented as (1, Din) == W.T
        else:
            self.mode = "dot"       # weights presented as (Din, Dout)
        self.b_kernel = self.biases.reshape(1, self.output_dim)

    def masked_weights(self, mask_key):
        # Weight-shaped multiplicative Gaussian mask, fresh per forward call
        # (same semantics as torch.normal(ones_like(W), p/(1-p)); JAX RNG stream).
        std = self.dropout_prob / (1.0 - self.dropout_prob)
        mask = 1.0 + std * jax.random.normal(mask_key, self.weights.shape, jnp.float32)
        return self.weights * mask

    def _orient(self, w):
        # Free reshapes (one dim is 1), hoisted orientation for the kernel layouts.
        if self.mode == "din1":
            return w.reshape(1, self.output_dim)
        if self.mode == "dout1":
            return w.reshape(1, self.input_dim)
        return w

    def __call__(self, x, mask_key, io_dtype=jnp.float32):
        x = jnp.asarray(x, io_dtype).reshape(-1, self.input_dim)
        w_kernel = self._orient(self.masked_weights(mask_key))
        return mgn_layer_forward(x, w_kernel, self.b_kernel,
                                 mode=self.mode, dout=self.output_dim,
                                 io_dtype=io_dtype)


class MGNModelPallas:
    """MGN_homo's model: MGN_Layer(1,H) -> ReLU -> MGN_Layer(H,1), fused into one
    lane-dense pallas_call (hidden activation never written to HBM)."""

    def __init__(self, hidden_dim, dropout_prob, key):
        k1, k2 = jax.random.split(key)
        self.hidden_dim = int(hidden_dim)
        self.layer1 = MGNLayerPallas(1, hidden_dim, dropout_prob, k1)
        self.layer2 = MGNLayerPallas(hidden_dim, 1, dropout_prob, k2)

    def __call__(self, x, mask_key, io_dtype=jnp.float32):
        k1, k2 = jax.random.split(mask_key)
        # All reshapes below are free (one dim is 1, contiguity preserved).
        w1m = self.layer1.masked_weights(k1).reshape(self.hidden_dim, 1)
        b1 = self.layer1.biases.reshape(self.hidden_dim, 1)
        w2m = self.layer2.masked_weights(k2).reshape(self.hidden_dim, 1)
        b2 = self.layer2.biases.reshape(1, 1)
        return mgn_homo_forward(x, w1m, b1, w2m, b2, io_dtype=io_dtype)


if __name__ == "__main__":
    key = jax.random.PRNGKey(0)
    kmodel, kmask, kx = jax.random.split(key, 3)

    # Shapes mirroring Experiments/MGN_homo.py: 400 scalar points, hidden width 32.
    no_points = 400
    hidden = 32
    dropout_prob = 0.5
    std = dropout_prob / (1.0 - dropout_prob)

    x = jax.random.uniform(kx, (no_points, 1), jnp.float32, -3.0, 3.0)
    model = MGNModelPallas(hidden, dropout_prob, kmodel)

    # --- Fused lane-dense forward (f32 I/O): 2-step lane grid, hidden in VMEM ---
    out = jax.block_until_ready(model(x, kmask))

    # Pure-JAX reference with identical per-call masks.
    k1, k2 = jax.random.split(kmask)
    mask1 = 1.0 + std * jax.random.normal(k1, model.layer1.weights.shape, jnp.float32)
    mask2 = 1.0 + std * jax.random.normal(k2, model.layer2.weights.shape, jnp.float32)
    h_ref = x @ (model.layer1.weights * mask1) + model.layer1.biases
    out_ref = jnp.maximum(h_ref, 0.0) @ (model.layer2.weights * mask2) + model.layer2.biases

    assert out.shape == (no_points, 1)
    assert jnp.allclose(out, out_ref, atol=1e-5, rtol=1e-5)
    assert bool(jnp.all(jnp.isfinite(out)))

    # --- Fused forward with bf16 streaming (halves HBM bytes on v6e/v7x) --------
    out_bf16 = jax.block_until_ready(model(x, kmask, io_dtype=jnp.bfloat16))
    assert jnp.allclose(out_bf16.astype(jnp.float32), out_ref, atol=5e-3, rtol=5e-2)

    # --- Standalone per-layer MGN_Layer kernels (unfused, small-problem path) ---
    h1 = model.layer1(x, k1)                                 # Din==1 branch (VPU)
    out_layers = jax.block_until_ready(model.layer2(jnp.maximum(h1, 0.0), k2))
    assert h1.shape == (no_points, hidden)
    assert jnp.allclose(h1, h_ref, atol=1e-5, rtol=1e-5)
    assert jnp.allclose(out_layers, out_ref, atol=1e-5, rtol=1e-5)

    print("KERNEL_OK")
</pallas_src>

<mosaic_0001>
module attributes {stable_mosaic.version = 11 : i64} {
  func.func @_mgn_fused_kernel(%arg0: i32, %arg1: memref<1x256xf32, #tpu.memory_space<vmem>>, %arg2: memref<32x1xf32, #tpu.memory_space<vmem>>, %arg3: memref<32x1xf32, #tpu.memory_space<vmem>>, %arg4: memref<32x1xf32, #tpu.memory_space<vmem>>, %arg5: memref<1x1xf32, #tpu.memory_space<vmem>>, %arg6: memref<1x256xf32, #tpu.memory_space<vmem>>) attributes {dimension_semantics = [#tpu.dimension_semantics<parallel>], iteration_bounds = array<i64: 2>, scalar_prefetch = 0 : i64, scratch_operands = 0 : i64, tpu.core_type = #tpu.core_type<tc>, window_params = [{transform_indices = @transform_0, window_bounds = array<i64: 1, 256>}, {pipeline_mode = #tpu.pipeline_mode<synchronous>, transform_indices = @transform_1, window_bounds = array<i64: 32, 1>}, {pipeline_mode = #tpu.pipeline_mode<synchronous>, transform_indices = @transform_2, window_bounds = array<i64: 32, 1>}, {pipeline_mode = #tpu.pipeline_mode<synchronous>, transform_indices = @transform_3, window_bounds = array<i64: 32, 1>}, {pipeline_mode = #tpu.pipeline_mode<synchronous>, transform_indices = @transform_4, window_bounds = array<i64: 1, 1>}, {transform_indices = @transform_5, window_bounds = array<i64: 1, 256>}]} {
    %c0 = arith.constant 0 : index
    %c0_0 = arith.constant 0 : index
    %0 = vector.load %arg1[%c0, %c0_0] : memref<1x256xf32, #tpu.memory_space<vmem>>, vector<1x256xf32>
    %c0_1 = arith.constant 0 : index
    %c0_2 = arith.constant 0 : index
    %1 = vector.load %arg2[%c0_1, %c0_2] : memref<32x1xf32, #tpu.memory_space<vmem>>, vector<32x1xf32>
    %2 = vector.broadcast %1 : vector<32x1xf32> to vector<32x256xf32>
    %3 = vector.broadcast %0 : vector<1x256xf32> to vector<32x256xf32>
    %4 = arith.mulf %2, %3 : vector<32x256xf32>
    %c0_3 = arith.constant 0 : index
    %c0_4 = arith.constant 0 : index
    %5 = vector.load %arg3[%c0_3, %c0_4] : memref<32x1xf32, #tpu.memory_space<vmem>>, vector<32x1xf32>
    %6 = vector.broadcast %5 : vector<32x1xf32> to vector<32x256xf32>
    %7 = arith.addf %4, %6 : vector<32x256xf32>
    %cst = arith.constant 0.000000e+00 : f32
    %8 = vector.broadcast %cst : f32 to vector<32x256xf32>
    %9 = arith.maximumf %7, %8 : vector<32x256xf32>
    %c0_5 = arith.constant 0 : index
    %c0_6 = arith.constant 0 : index
    %10 = vector.load %arg4[%c0_5, %c0_6] : memref<32x1xf32, #tpu.memory_space<vmem>>, vector<32x1xf32>
    %11 = vector.broadcast %10 : vector<32x1xf32> to vector<32x256xf32>
    %12 = arith.mulf %9, %11 : vector<32x256xf32>
    %cst_7 = arith.constant dense<0.000000e+00> : vector<256xf32>
    %13 = vector.multi_reduction <add>, %12, %cst_7 [0] : vector<32x256xf32> to vector<256xf32>
    %14 = vector.shape_cast %13 : vector<256xf32> to vector<1x256xf32>
    %c0_8 = arith.constant 0 : index
    %c0_9 = arith.constant 0 : index
    %15 = vector.load %arg5[%c0_8, %c0_9] : memref<1x1xf32, #tpu.memory_space<vmem>>, vector<1x1xf32>
    %16 = vector.broadcast %15 : vector<1x1xf32> to vector<1x256xf32>
    %17 = arith.addf %14, %16 : vector<1x256xf32>
    %c0_10 = arith.constant 0 : index
    %c0_11 = arith.constant 0 : index
    %18 = vector.load %arg6[%c0_10, %c0_11] : memref<1x256xf32, #tpu.memory_space<vmem>>, vector<1x256xf32>
    tpu.vector_store %arg6[%c0_10, %c0_11], %17 {strides = array<i32>} : memref<1x256xf32, #tpu.memory_space<vmem>>, vector<1x256xf32>,
    return
  }
  func.func @transform_0(%arg0: i32) -> (i32, i32) {
    %c0_i32 = arith.constant 0 : i32
    %c0_i32_0 = arith.constant 0 : i32
    return %c0_i32, %arg0 : i32, i32
  }
  func.func @transform_1(%arg0: i32) -> (i32, i32) {
    %c0_i32 = arith.constant 0 : i32
    %c0_i32_0 = arith.constant 0 : i32
    %c0_i32_1 = arith.constant 0 : i32
    return %c0_i32, %c0_i32_0 : i32, i32
  }
  func.func @transform_2(%arg0: i32) -> (i32, i32) {
    %c0_i32 = arith.constant 0 : i32
    %c0_i32_0 = arith.constant 0 : i32
    %c0_i32_1 = arith.constant 0 : i32
    return %c0_i32, %c0_i32_0 : i32, i32
  }
  func.func @transform_3(%arg0: i32) -> (i32, i32) {
    %c0_i32 = arith.constant 0 : i32
    %c0_i32_0 = arith.constant 0 : i32
    %c0_i32_1 = arith.constant 0 : i32
    return %c0_i32, %c0_i32_0 : i32, i32
  }
  func.func @transform_4(%arg0: i32) -> (i32, i32) {
    %c0_i32 = arith.constant 0 : i32
    %c0_i32_0 = arith.constant 0 : i32
    %c0_i32_1 = arith.constant 0 : i32
    return %c0_i32, %c0_i32_0 : i32, i32
  }
  func.func @transform_5(%arg0: i32) -> (i32, i32) {
    %c0_i32 = arith.constant 0 : i32
    %c0_i32_0 = arith.constant 0 : i32
    return %c0_i32, %arg0 : i32, i32
  }
}

</mosaic_0001>

<bundles_post_ra>
// kernel: tpu_custom_call.1
= control target key start
LH: loop header
LB: loop body
LE: loop exit
PB: predicated region body
PF: predicated region fallthrough
CT: control target
= control target key end

     0   :  { %s720_s0 = inlined_call_operand.vmem [shape: f32[1,400], index: 0, kind: input, shape index: {}]   ;;  %s721_s1 = inlined_call_operand.vmem [shape: f32[32,1], index: 1, kind: input, shape index: {}]   ;;  %s722_s2 = inlined_call_operand.vmem [shape: f32[32,1], index: 2, kind: input, shape index: {}]   ;;  %s723_s3 = inlined_call_operand.vmem [shape: f32[32,1], index: 3, kind: input, shape index: {}]   ;;  %s724_s4 = inlined_call_operand.<no memory space> [shape: f32[1,1], index: 4, kind: input, shape index: {}]   ;;  %s725_s5 = inlined_call_operand.hbm [shape: f32[1,400], index: 5, kind: output, shape index: {}]  }
   0x1   :  { %v10_v0 = vstv %s724_s4 }
   0x2   :  { %11 = vst [vmem:[#allocation2] sm:$0x1] %v10_v0 }
   0x3   :  { %12 = vsyncpa [#allocation4], 0 }
   0x4   :  { %14 = vsyncpa [#allocation4 + $0x1], 0  ;;  %s596_s20 = smov 0   ;;  %s598_s21 = smov 0  }
   0x5   :  { %s600_s22 = smov 0   ;;  %s602_s23 = smov 0  }
   0x6 LB: > { %s444_s4 = sadd.s32 4294967295, %s560_s23   ;;  %s445_s24 = sadd.s32 4294967294, %s560_s23   ;;  %s560_s23 = sphi %s602_s23, %s731_s23   ;;  %s556_s22 = sphi %s600_s22, %s730_s22   ;;  %s552_s21 = sphi %s598_s21, %s729_s21   ;;  %s548_s20 = sphi %s596_s20, %s728_s20  }
   0x7   : > { %s619_s25 = sadd.s32 1, %s560_s23   ;;  %s137_s26 = sadd.s32 1, %s556_s22 }
   0x8   : > { %s134_s27 = ssub.s32 %s560_s23, %s619_s25  ;;  %p147_p0 = scmp.ne.s32.totalorder %s556_s22, %s552_s21 }
   0x9   : > { %p135_p1 = scmp.eq.s32.totalorder %s134_s27, 0  ;;  %p148_p2 = scmp.eq.s32.totalorder %s444_s4, 1 }
   0xa   : > { %p153_p3 = scmp.ne.s32.totalorder %s552_s21, %s548_s20  ;;  %p154_p4 = scmp.eq.s32.totalorder %s445_s24, 1 }
   0xb   : > { %s631_s28 = scalar_select %p135_p1, %s556_s22, %s137_s26  }
   0xc   : > { %p633_p5 = por %p148_p2, %p147_p0  ;;  %p637_p6 = por %p154_p4, %p153_p3 }
   0xd   : > { %p448_p7 = scmp.ge.s32.totalorder %s560_s23, 1  ;;  %p192_p8 = scmp.lt.s32.totalorder %s560_s23, 3 }
   0xf   : > { %p193_p9 = pnand %p448_p7, %p192_p8 }
  0x10   : > { %s681_s13 = sshll.u32 (!%p193_p9), %s444_s4, 1  ;;  %s216_s4 = sand.u32 (!%p193_p9), 1, %s552_s21  }
  0x11   : > { %196 = sbr.rel (%p193_p9) target bundleno = 191 (0xbf), region = 40  ;;  %p220_p10 = scmp.lt.s32.totalorder (!%p193_p9), %s681_s13, 3 }
  0x12   : > { %s449_s18 = sshll.u32 (!%p193_p9), %s216_s4, 1  ;;  %s384_s26 = scalar_lea.hbm (!%p193_p9), %s725_s5, %s681_s13 }
  0x13   : > { %s218_s27 = scalar_lea.vmem (!%p193_p9), [#allocation3], %s449_s18  ;;  %s388_s7 = sshll.u32 (!%p193_p9), %s384_s26, 4  ;;  %s389_s7 = int_to_ptr.hbm [resolvable:$true] %s388_s7 }
  0x14   : > { %s386_s6 = sshll.u32 (!%p193_p9), %s218_s27, 4  ;;  %s374_s8 = scalar_lea.sflag (!%p193_p9), [#allocation4], %s216_s4  ;;  %s387_s6 = int_to_ptr.vmem [resolvable:$true] %s386_s6 }
  0x15   : > { %s512_s9 = sshra.s32 (!%p193_p9), %s389_s7, 4  ;;  %s513_s9 = int_to_ptr.hbm [resolvable:$true] %s512_s9 }
  0x16   : > { %v228_v1 = vld [vmem:[%s721_s1 + $0x10] sm:$0xff]  ;;  %v226_v2 = vld [vmem:[%s721_s1] sm:$0xff]  ;;  %v562_v3 = vmov 0   ;;  %v264_v4 = vld [vmem:[%s722_s2 + $0x8] sm:$0xff]  ;;  %s221_s14 = scalar_select %p220_p10, %s681_s13, 3  ;;  %vm365_vm0 = vcmask 1040384  }
  0x17   : > { %496 = vset.pattern.permute.xlu1 %v562_v3  ;;  %495 = vset.pattern.permute.xlu0 %v562_v3  ;;  %v263_v5 = vld [vmem:[%s722_s2] sm:$0xff]  ;;  %v227_v6 = vld [vmem:[%s721_s1 + $0x8] sm:$0xff]  ;;  %v229_v7 = vld [vmem:[%s721_s1 + $0x18] sm:$0xff]  ;;  %s514_s10 = scalar_lea.hbm %s513_s9, 2  ;;  %s518_s13 = scalar_lea.hbm %s725_s5, 4 }
  0x18   : > { %242 = vperm.xlu1 %496, %v228_v1   ;;  %232 = vperm.xlu0 %495, %v226_v2   ;;  %v266_v8 = vld [vmem:[%s722_s2 + $0x18] sm:$0xff]  ;;  %v265_v9 = vld [vmem:[%s722_s2 + $0x10] sm:$0xff]  ;;  %v303_v10 = vld [vmem:[%s723_s3] sm:$0xff]  ;;  %s222_s17 = scalar_lea.vmem %s720_s0, %s221_s14  ;;  %p515_p11 = scmp.ne.s32.totalorder %s513_s9, %s514_s10 }
  0x19   : > { %497 = vset.pattern.permute.xlu2 %v562_v3  ;;  %v305_v11 = vld [vmem:[%s723_s3 + $0x10] sm:$0xff]  ;;  %v304_v12 = vld [vmem:[%s723_s3 + $0x8] sm:$0xff]  ;;  %v306_v13 = vld [vmem:[%s723_s3 + $0x18] sm:$0xff]  ;;  %p519_p0 = scmp.lt.s32.totalorder %s513_s9, %s725_s5  ;;  %p520_p1 = scmp.lt.s32.totalorder %s518_s13, %s514_s10 }
  0x1a   : > { %274 = vperm.xlu2 %497, %v264_v4   ;;  %v353_v14 = vld [vmem:[#allocation2] sm:$0x1]  ;;  %p516_p12 = pnand %p515_p11, %p633_p5 }
  0x1b   : > { %v225_v19 = vld [vmem:[%s222_s17] sm:$0x3]  ;;  %p521_p2 = por %p520_p1, %p519_p0 }
  0x1c   : > { %v251_v22 = vperm.slane %v225_v19, 0  ;;  %v252_v23 = vperm.slane %v225_v19, 1  ;;  %p517_p13 = pneg %p516_p12 }
  0x1e   : > { %p522_p3 = pnand %p521_p2, %p517_p13 }
  0x20   : > { %269 = vperm.xlu1 %496, %v263_v5   ;;  %237 = vperm.xlu0 %495, %v227_v6  }
  0x22   : > { %247 = vperm.xlu2 %497, %v229_v7  }
  0x28   : > { %284 = vperm.xlu1 %496, %v266_v8   ;;  %279 = vperm.xlu0 %495, %v265_v9  }
  0x2a   : > { %309 = vperm.xlu2 %497, %v303_v10  }
  0x30   : > { %319 = vperm.xlu1 %496, %v305_v11   ;;  %314 = vperm.xlu0 %495, %v304_v12  }
  0x32   : > { %324 = vperm.xlu2 %497, %v306_v13  }
  0x38   : > { %356 = vperm.xlu0 %495, %v353_v14  }
  0x74   : > { %v275_v15 = vpop.permute.xlu2 %274 }
  0x7c   : > { %v248_v18 = vpop.permute.xlu2 %247 }
  0x7d   : > { %v261_v32 = vmul.f32 %v251_v22, %v248_v18  ;;  %v262_v33 = vmul.f32 %v252_v23, %v248_v18  ;;  %v368_v18 = vlaneseq }
  0x7f   : > { %vm370_vm1 = vcmp.lt.s32.totalorder %v368_v18, 256 }
  0x84   : > { %v310_v34 = vpop.permute.xlu2 %309 }
  0x8a   : > { %v243_v16 = vpop.permute.xlu1 %242  ;;  %v233_v17 = vpop.permute.xlu0 %232 }
  0x8b   : > { %v255_v24 = vmul.f32 %v251_v22, %v233_v17  ;;  %v256_v25 = vmul.f32 %v252_v23, %v233_v17  ;;  %v259_v35 = vmul.f32 %v251_v22, %v243_v16  ;;  %v260_v36 = vmul.f32 %v252_v23, %v243_v16 }
  0x8c   : > { %v325_v61 = vpop.permute.xlu2 %324 }
  0x92   : > { %v270_v20 = vpop.permute.xlu1 %269  ;;  %v238_v21 = vpop.permute.xlu0 %237 }
  0x93   : > { %v257_v26 = vmul.f32 %v251_v22, %v238_v21  ;;  %v258_v27 = vmul.f32 %v252_v23, %v238_v21  ;;  %v287_v28 = vadd.f32 %v270_v20, %v255_v24  ;;  %v288_v29 = vadd.f32 %v270_v20, %v256_v25 }
  0x95   : > { %v289_v37 = vadd.f32 %v275_v15, %v257_v26  ;;  %v290_v38 = vadd.f32 %v275_v15, %v258_v27  ;;  %v295_v39 = vmax.f32 %v287_v28, 0.0  ;;  %v296_v40 = vmax.f32 %v288_v29, 0.0 }
  0x97   : > { %v297_v45 = vmax.f32 %v289_v37, 0.0  ;;  %v298_v46 = vmax.f32 %v290_v38, 0.0  ;;  %v327_v47 = vmul.f32 %v310_v34, %v295_v39  ;;  %v328_v48 = vmul.f32 %v310_v34, %v296_v40 }
  0x9a   : > { %v285_v30 = vpop.permute.xlu1 %284  ;;  %v280_v31 = vpop.permute.xlu0 %279 }
  0x9b   : > { %v293_v41 = vadd.f32 %v285_v30, %v261_v32  ;;  %v294_v42 = vadd.f32 %v285_v30, %v262_v33  ;;  %v291_v43 = vadd.f32 %v280_v31, %v259_v35  ;;  %v292_v44 = vadd.f32 %v280_v31, %v260_v36 }
  0x9d   : > { %v301_v49 = vmax.f32 %v293_v41, 0.0  ;;  %v302_v50 = vmax.f32 %v294_v42, 0.0  ;;  %v299_v53 = vmax.f32 %v291_v43, 0.0  ;;  %v300_v54 = vmax.f32 %v292_v44, 0.0 }
  0x9f   : > { %v333_v62 = vmul.f32 %v325_v61, %v301_v49  ;;  %v334_v63 = vmul.f32 %v325_v61, %v302_v50 }
  0xa2   : > { %v320_v51 = vpop.permute.xlu1 %319  ;;  %v315_v52 = vpop.permute.xlu0 %314 }
  0xa3   : > { %v329_v55 = vmul.f32 %v315_v52, %v297_v45  ;;  %v330_v56 = vmul.f32 %v315_v52, %v298_v46  ;;  %v331_v57 = vmul.f32 %v320_v51, %v299_v53  ;;  %v332_v58 = vmul.f32 %v320_v51, %v300_v54 }
  0xa5   : > { %v335_v59 = vadd.f32 %v329_v55, %v327_v47  ;;  %v344_v60 = vadd.f32 %v330_v56, %v328_v48 }
  0xa7   : > { %v336_v0 = vadd.f32 %v335_v59, %v331_v57  ;;  %v345_v1 = vadd.f32 %v344_v60, %v332_v58 }
  0xa9   : > { %v337_v2 = vadd.f32 %v336_v0, %v333_v62  ;;  %v346_v3 = vadd.f32 %v345_v1, %v334_v63 }
  0xaa   : > { %v357_v12 = vpop.permute.xlu0 %356 }
  0xab   : > { %v338_v4 = vrot.slane %v337_v2, 4  ;;  %v347_v5 = vrot.slane %v346_v3, 4  ;;  %v359_v17 = vperm.slane %v357_v12, 0 }
  0xad   : > { %v339_v6 = vadd.f32 %v338_v4, %v337_v2  ;;  %v348_v7 = vadd.f32 %v347_v5, %v346_v3 }
  0xaf   : > { %v340_v8 = vrot.slane %v339_v6, 2  ;;  %v349_v9 = vrot.slane %v348_v7, 2 }
  0xb1   : > { %v341_v10 = vadd.f32 %v340_v8, %v339_v6  ;;  %v350_v11 = vadd.f32 %v349_v9, %v348_v7 }
  0xb3   : > { %v342_v13 = vrot.slane %v341_v10, 1  ;;  %v351_v14 = vrot.slane %v350_v11, 1 }
  0xb5   : > { %v343_v15 = vadd.f32 %v342_v13, %v341_v10  ;;  %v352_v16 = vadd.f32 %v351_v14, %v350_v11 }
  0xb7   : > { %v361_v19 = vadd.f32 %v359_v17, %v352_v16  ;;  %v360_v20 = vadd.f32 %v359_v17, %v343_v15 }
  0xb9   : > { %v364_v21 = vrot.slane %v361_v19, 7 }
  0xbb   : > { %v366_v22 = vsel %vm365_vm0, %v360_v20, %v364_v21 }
  0xbc   : > { %372 = vst.msk [vmem:[%s218_s27] sm:$0x3] %vm370_vm1, %v366_v22 }
  0xbd   : > { %525 = shalt.err (!%p522_p3)
}
  0xbe   : > { %455 = dma.vmem_to_hbm [thread:$0]  (%p633_p5), %s387_s6, 32, %s389_s7, %s374_s8  }
  0xbf PF: > { %p461_p4 = scmp.ge.s32.totalorder %s560_s23, 2  ;;  %s400_s16 = sand.u32 1, %s548_s20  }
  0xc0   : > { %s401_s17 = scalar_lea.sflag [#allocation4], %s400_s16 }
  0xc1   : > { %p458_p7 = pnand %p461_p4, %p637_p6 }
  0xc3   : > { %p459_p8 = pneg %p458_p7 }
  0xc5   : > { %543 = dma.done.wait (%p459_p8), %s401_s17, 32  }
  0xc6   : > { %545 = vsyncadd (%p459_p8), %s401_s17, 4294967264  ;;  %p17_p9 = scmp.ge.s32.totalorder %s619_s25, 4   ;;  %s728_s20 = smov %s552_s21 }
  0xc7   : > { %s729_s21 = smov %s556_s22  ;;  %s730_s22 = smov %s631_s28 }
  0xc8   : > { %s731_s23 = smov %s619_s25  ;;  %19 = sbr.rel (!%p17_p9) target bundleno = 6 (0x6), region = 75 }
  0xcd   :  { %407 = vsyncpa [#allocation4], 1 }
  0xce   :  { %409 = vsyncpa [#allocation4 + $0x1], 1 }

</bundles_post_ra>
